<compile_context>
chip_gen: v7x
topology: tpu7x:2x2x1
jax: 0.10.0
libtpu: 0.0.40
codegen_flags: <defaults>
</compile_context>

<pallas_src>
import functools

import jax
import jax.numpy as jnp
from jax import lax
from jax.experimental import pallas as pl
from jax.experimental.pallas import tpu as pltpu

LANE = 128   # lane-dense padded head width (mu | var | val | zero-pad)
H1 = 512
H2 = 256


def a3c_kernel(x_ref, w1_ref, w2_ref, wh_ref, b_ref, out_ref, *, act_size):
    x = x_ref[...]

    # single bias slab (3, 512) f32: row 0 = b1, row 1 = b2 (padded),
    # row 2 = fused head bias (padded to 128 lanes).
    b1 = b_ref[0:1, :]
    b2 = b_ref[1:2, :H2]
    bh = b_ref[2:3, :LANE]

    # base: Linear(obs,512)+ReLU, Linear(512,256)+ReLU  (bf16 MXU, f32 accum)
    h1 = jnp.dot(x.astype(jnp.bfloat16), w1_ref[...],
                 preferred_element_type=jnp.float32) + b1
    h1 = jnp.maximum(h1, 0.0)
    h2 = jnp.dot(h1.astype(jnp.bfloat16), w2_ref[...],
                 preferred_element_type=jnp.float32) + b2
    h2 = jnp.maximum(h2, 0.0)

    # fused heads: one (256, 128) f32 matmul; cols [0,act)=mu, [act,2act)=var,
    # [2act,2act+1)=val, rest zero padding.  wh is f32 for critic accuracy.
    head = jnp.dot(h2, wh_ref[...], preferred_element_type=jnp.float32) + bh

    mu = jnp.tanh(head)
    # stable softplus == torch.nn.Softplus(beta=1, threshold=20) to <2.1e-9
    var = jnp.maximum(head, 0.0) + jnp.log1p(jnp.exp(-jnp.abs(head)))

    col = lax.broadcasted_iota(jnp.int32, head.shape, 1)
    out_ref[...] = jnp.where(col < act_size, mu,
                             jnp.where(col < 2 * act_size, var, head))


def prepare_params(p):
    """Pad obs to a full tile, fuse head weights, fuse biases into one slab."""
    obs = p["w1"].shape[0]
    act = p["wmu"].shape[1]
    n_head = 2 * act + 1
    assert n_head <= LANE, "fused head width must fit in 128 lanes"

    # explicit full-tile pad of the obs axis (bf16 sublane tile = 16)
    obs_pad = -(-obs // 32) * 32
    w1 = jnp.zeros((obs_pad, H1), jnp.float32).at[:obs, :].set(p["w1"])

    wh = jnp.zeros((H2, LANE), jnp.float32)
    wh = (wh.at[:, :act].set(p["wmu"])
            .at[:, act:2 * act].set(p["wvar"])
            .at[:, 2 * act:n_head].set(p["wval"]))

    bias = jnp.zeros((3, H1), jnp.float32)
    bias = (bias.at[0, :].set(p["b1"].reshape(-1))
                .at[1, :H2].set(p["b2"].reshape(-1))
                .at[2, :act].set(p["bmu"].reshape(-1))
                .at[2, act:2 * act].set(p["bvar"].reshape(-1))
                .at[2, 2 * act:n_head].set(p["bval"].reshape(-1)))

    return dict(
        w1=w1.astype(jnp.bfloat16),
        w2=p["w2"].astype(jnp.bfloat16),
        wh=wh,          # keep f32: feeds the critic value output
        bias=bias,      # f32
    ), act


@functools.partial(jax.jit, static_argnames=("act_size", "batch_tile"))
def a3c_forward(x, fused, act_size, batch_tile=256):
    """x: (B, obs) float32.  fused: dict from prepare_params.

    batch_tile: 128 on v5e (4x128 MXU), 256 on v6e/v7x (2x256 MXU).
    """
    B, obs = x.shape
    obs_pad = fused["w1"].shape[0]
    if obs < obs_pad:
        x = jnp.pad(x, ((0, 0), (0, obs_pad - obs)))

    weights = (fused["w1"], fused["w2"], fused["wh"], fused["bias"])
    param_bytes = sum(int(a.size) * a.dtype.itemsize for a in weights)
    kernel = functools.partial(a3c_kernel, act_size=act_size)

    def cost(b):
        return pl.CostEstimate(
            flops=2 * b * (obs_pad * H1 + H1 * H2 + H2 * LANE),
            transcendentals=3 * b * LANE,              # tanh, exp, log1p
            bytes_accessed=param_bytes + b * (obs_pad + LANE) * 4)

    if B < batch_tile:
        # per-env-step path: one launch, no grid (a grid is pure overhead here)
        vmem = pl.BlockSpec(memory_space=pltpu.MemorySpace.VMEM)
        slab = pl.pallas_call(
            kernel,
            out_shape=jax.ShapeDtypeStruct((B, LANE), jnp.float32),
            in_specs=[vmem] * 5,
            out_specs=vmem,
            cost_estimate=cost(B),
        )(x, *weights)
    else:
        # rollout-batch path: 1-D batch grid, weights fetched once and kept
        # VMEM-resident (index_map -> (0, 0)), batch axis "parallel".
        Bp = pl.cdiv(B, batch_tile) * batch_tile
        if Bp != B:
            x = jnp.pad(x, ((0, Bp - B), (0, 0)))
        slab = pl.pallas_call(
            kernel,
            out_shape=jax.ShapeDtypeStruct((Bp, LANE), jnp.float32),
            grid=(Bp // batch_tile,),
            in_specs=[
                pl.BlockSpec((batch_tile, obs_pad), lambda i: (i, 0)),
                pl.BlockSpec((obs_pad, H1), lambda i: (0, 0)),
                pl.BlockSpec((H1, H2), lambda i: (0, 0)),
                pl.BlockSpec((H2, LANE), lambda i: (0, 0)),
                pl.BlockSpec((3, H1), lambda i: (0, 0)),
            ],
            out_specs=pl.BlockSpec((batch_tile, LANE), lambda i: (i, 0)),
            compiler_params=pltpu.CompilerParams(
                dimension_semantics=("parallel",)),
            cost_estimate=cost(Bp),
        )(x, *weights)
        slab = slab[:B]

    mu = slab[:, :act_size]
    var = slab[:, act_size:2 * act_size]
    val = slab[:, 2 * act_size:2 * act_size + 1]
    return mu, var, val


def init_params(key, obs_size, act_size):
    """Deterministic f32 init mimicking PyTorch nn.Linear default."""
    def linear(key, fan_in, fan_out):
        kw, kb = jax.random.split(key)
        bound = 1.0 / jnp.sqrt(fan_in)
        w = jax.random.uniform(kw, (fan_in, fan_out), jnp.float32, -bound, bound)
        b = jax.random.uniform(kb, (1, fan_out), jnp.float32, -bound, bound)
        return w, b

    keys = jax.random.split(key, 5)
    w1, b1 = linear(keys[0], obs_size, H1)
    w2, b2 = linear(keys[1], H1, H2)
    wmu, bmu = linear(keys[2], H2, act_size)
    wvar, bvar = linear(keys[3], H2, act_size)
    wval, bval = linear(keys[4], H2, 1)
    return dict(w1=w1, b1=b1, w2=w2, b2=b2,
                wmu=wmu, bmu=bmu, wvar=wvar, bvar=bvar,
                wval=wval, bval=bval)


def a3c_reference(x, p):
    h1 = jnp.maximum(x @ p["w1"] + p["b1"], 0.0)
    h2 = jnp.maximum(h1 @ p["w2"] + p["b2"], 0.0)
    mu = jnp.tanh(h2 @ p["wmu"] + p["bmu"])
    var = jax.nn.softplus(h2 @ p["wvar"] + p["bvar"])
    val = h2 @ p["wval"] + p["bval"]
    return mu, var, val


if __name__ == "__main__":
    # BipedalWalker-v3: obs_size=24, act_size=4
    obs_size, act_size, batch = 24, 4, 8

    key = jax.random.PRNGKey(0)
    kx, kp, kx2 = jax.random.split(key, 3)
    x = jax.random.normal(kx, (batch, obs_size), jnp.float32)
    params_f32 = init_params(kp, obs_size, act_size)
    fused, act = prepare_params(params_f32)

    # --- small-batch (per-env-step) path ---
    mu, var, val = a3c_forward(x, fused, act_size=act, batch_tile=256)
    jax.block_until_ready((mu, var, val))

    mu_r, var_r, val_r = a3c_reference(x, params_f32)
    assert mu.shape == (batch, act_size)
    assert var.shape == (batch, act_size)
    assert val.shape == (batch, 1)
    # f32 reference; kernel uses bf16 base weights -> loosened tolerance.
    assert jnp.allclose(mu, mu_r, atol=3e-2, rtol=3e-2)
    assert jnp.allclose(var, var_r, atol=3e-2, rtol=3e-2)
    assert jnp.allclose(val, val_r, atol=3e-2, rtol=3e-2)

    # --- rollout-batch grid path (B > tile, non-multiple -> pad & slice) ---
    xb = jax.random.normal(kx2, (200, obs_size), jnp.float32)
    mu2, var2, val2 = a3c_forward(xb, fused, act_size=act, batch_tile=128)
    jax.block_until_ready((mu2, var2, val2))

    mu2_r, var2_r, val2_r = a3c_reference(xb, params_f32)
    assert mu2.shape == (200, act_size)
    assert var2.shape == (200, act_size)
    assert val2.shape == (200, 1)
    assert jnp.allclose(mu2, mu2_r, atol=3e-2, rtol=3e-2)
    assert jnp.allclose(var2, var2_r, atol=3e-2, rtol=3e-2)
    assert jnp.allclose(val2, val2_r, atol=3e-2, rtol=3e-2)

    print("KERNEL_OK")
</pallas_src>

<mosaic_0001>
module attributes {stable_mosaic.version = 11 : i64} {
  func.func @a3c_kernel(%arg0: memref<8x32xf32, #tpu.memory_space<vmem>>, %arg1: memref<32x512xbf16, #tpu.memory_space<vmem>>, %arg2: memref<512x256xbf16, #tpu.memory_space<vmem>>, %arg3: memref<256x128xf32, #tpu.memory_space<vmem>>, %arg4: memref<3x512xf32, #tpu.memory_space<vmem>>, %arg5: memref<8x128xf32, #tpu.memory_space<vmem>>) attributes {dimension_semantics = [], scalar_prefetch = 0 : i64, scratch_operands = 0 : i64, tpu.core_type = #tpu.core_type<tc>} {
    %c0 = arith.constant 0 : index
    %c0_0 = arith.constant 0 : index
    %0 = vector.load %arg0[%c0, %c0_0] : memref<8x32xf32, #tpu.memory_space<vmem>>, vector<8x32xf32>
    %c0_1 = arith.constant 0 : index
    %c0_2 = arith.constant 0 : index
    %1 = vector.load %arg4[%c0_1, %c0_2] : memref<3x512xf32, #tpu.memory_space<vmem>>, vector<1x512xf32>
    %c1 = arith.constant 1 : index
    %c0_3 = arith.constant 0 : index
    %2 = vector.load %arg4[%c1, %c0_3] : memref<3x512xf32, #tpu.memory_space<vmem>>, vector<1x256xf32>
    %c2 = arith.constant 2 : index
    %c0_4 = arith.constant 0 : index
    %3 = vector.load %arg4[%c2, %c0_4] : memref<3x512xf32, #tpu.memory_space<vmem>>, vector<1x128xf32>
    %4 = arith.truncf %0 : vector<8x32xf32> to vector<8x32xbf16>
    %c0_5 = arith.constant 0 : index
    %c0_6 = arith.constant 0 : index
    %5 = vector.load %arg1[%c0_5, %c0_6] : memref<32x512xbf16, #tpu.memory_space<vmem>>, vector<32x512xbf16>
    %cst = arith.constant dense<0.000000e+00> : vector<8x512xf32>
    %6 = tpu.matmul %4, %5, %cst {dimension_numbers = #tpu.dot_dimension_numbers<[1], [0], [0], [1], [0, 0, 1, 1], [], []>} : vector<8x32xbf16>, vector<32x512xbf16>, vector<8x512xf32> -> vector<8x512xf32>
    %7 = vector.broadcast %1 : vector<1x512xf32> to vector<8x512xf32>
    %8 = arith.addf %6, %7 : vector<8x512xf32>
    %cst_7 = arith.constant 0.000000e+00 : f32
    %9 = vector.broadcast %cst_7 : f32 to vector<8x512xf32>
    %10 = arith.maximumf %8, %9 : vector<8x512xf32>
    %11 = arith.truncf %10 : vector<8x512xf32> to vector<8x512xbf16>
    %c0_8 = arith.constant 0 : index
    %c0_9 = arith.constant 0 : index
    %12 = vector.load %arg2[%c0_8, %c0_9] : memref<512x256xbf16, #tpu.memory_space<vmem>>, vector<512x256xbf16>
    %cst_10 = arith.constant dense<0.000000e+00> : vector<8x256xf32>
    %13 = tpu.matmul %11, %12, %cst_10 {dimension_numbers = #tpu.dot_dimension_numbers<[1], [0], [0], [1], [0, 0, 1, 1], [], []>} : vector<8x512xbf16>, vector<512x256xbf16>, vector<8x256xf32> -> vector<8x256xf32>
    %14 = vector.broadcast %2 : vector<1x256xf32> to vector<8x256xf32>
    %15 = arith.addf %13, %14 : vector<8x256xf32>
    %cst_11 = arith.constant 0.000000e+00 : f32
    %16 = vector.broadcast %cst_11 : f32 to vector<8x256xf32>
    %17 = arith.maximumf %15, %16 : vector<8x256xf32>
    %c0_12 = arith.constant 0 : index
    %c0_13 = arith.constant 0 : index
    %18 = vector.load %arg3[%c0_12, %c0_13] : memref<256x128xf32, #tpu.memory_space<vmem>>, vector<256x128xf32>
    %cst_14 = arith.constant dense<0.000000e+00> : vector<8x128xf32>
    %19 = tpu.matmul %17, %18, %cst_14 {dimension_numbers = #tpu.dot_dimension_numbers<[1], [0], [0], [1], [0, 0, 1, 1], [], []>} : vector<8x256xf32>, vector<256x128xf32>, vector<8x128xf32> -> vector<8x128xf32>
    %20 = vector.broadcast %3 : vector<1x128xf32> to vector<8x128xf32>
    %21 = arith.addf %19, %20 : vector<8x128xf32>
    %22 = math.tanh %21 : vector<8x128xf32>
    %cst_15 = arith.constant 0.000000e+00 : f32
    %23 = vector.broadcast %cst_15 : f32 to vector<8x128xf32>
    %24 = arith.maximumf %21, %23 : vector<8x128xf32>
    %25 = math.absf %21 : vector<8x128xf32>
    %cst_16 = arith.constant 0.000000e+00 : f32
    %26 = vector.broadcast %cst_16 : f32 to vector<8x128xf32>
    %27 = arith.subf %26, %25 : vector<8x128xf32>
    %28 = math.exp %27 : vector<8x128xf32>
    %29 = math.log1p %28 : vector<8x128xf32>
    %30 = arith.addf %24, %29 : vector<8x128xf32>
    %31 = tpu.iota {dimensions = array<i32: 1>} : vector<8x128xi32>
    %c4_i32 = arith.constant 4 : i32
    %32 = vector.broadcast %c4_i32 : i32 to vector<8x128xi32>
    %33 = arith.cmpi slt, %31, %32 : vector<8x128xi32>
    %c8_i32 = arith.constant 8 : i32
    %34 = vector.broadcast %c8_i32 : i32 to vector<8x128xi32>
    %35 = arith.cmpi slt, %31, %34 : vector<8x128xi32>
    %36 = arith.select %35, %30, %21 : vector<8x128xi1>, vector<8x128xf32>
    %37 = arith.select %33, %22, %36 : vector<8x128xi1>, vector<8x128xf32>
    %c0_17 = arith.constant 0 : index
    %c0_18 = arith.constant 0 : index
    %38 = vector.load %arg5[%c0_17, %c0_18] : memref<8x128xf32, #tpu.memory_space<vmem>>, vector<8x128xf32>
    tpu.vector_store %arg5[%c0_17, %c0_18], %37 {strides = array<i32>} : memref<8x128xf32, #tpu.memory_space<vmem>>, vector<8x128xf32>,
    return
  }
}

</mosaic_0001>

<bundles_post_ra>
// kernel: a3c_forward.1
= control target key start
LH: loop header
LB: loop body
LE: loop exit
PB: predicated region body
PF: predicated region fallthrough
CT: control target
= control target key end

     0   :  { %10 = vsyncpa [#allocation3], 0  ;;  %s1297_s0 = inlined_call_operand.vmem [shape: f32[8,32], index: 0, kind: input, shape index: {}]   ;;  %s1298_s1 = inlined_call_operand.hbm [shape: bf16[32,512], index: 1, kind: input, shape index: {}]   ;;  %s1299_s2 = inlined_call_operand.hbm [shape: bf16[512,256], index: 2, kind: input, shape index: {}]   ;;  %s1300_s3 = inlined_call_operand.hbm [shape: f32[256,128], index: 3, kind: input, shape index: {}]   ;;  %s1301_s4 = inlined_call_operand.vmem [shape: f32[3,512], index: 4, kind: input, shape index: {}]   ;;  %s1302_s5 = inlined_call_operand.vmem [shape: f32[8,128], index: 5, kind: output, shape index: {}]  }
   0x1   :  { %11 = vsyncpa [#allocation5], 0  ;;  %s1184_s18 = smov [#allocation4]   ;;  %s1114_s22 = scalar_lea.hbm %s1299_s2, 8192 }
   0x2   :  { %s31_s19 = sshll.u32 %s1184_s18, 4  ;;  %p1115_p0 = scmp.ne.s32.totalorder %s1299_s2, %s1114_s22  ;;  %s32_s19 = int_to_ptr.vmem [resolvable:$true] %s31_s19 }
   0x3   :  { %p1118_p1 = scmp.lt.u32.totalorder %s1114_s22, %s1299_s2 }
   0x5   :  { %p1120_p2 = pnand %p1118_p1, %p1115_p0 }
   0x7   :  { %1123 = shalt.err (!%p1120_p2)
}
   0x8   :  { %s1124_s27 = scalar_lea.vmem %s32_s19, 8192  ;;  %p1129_p4 = scmp.lt.s32.totalorder %s32_s19, %s32_s19 }
   0x9   :  { %p1125_p3 = scmp.ne.s32.totalorder %s32_s19, %s1124_s27  ;;  %p1130_p5 = scmp.lt.s32.totalorder %s1124_s27, %s1124_s27 }
   0xb   :  { %p1131_p6 = por %p1130_p5, %p1129_p4 }
   0xd   :  { %p1132_p7 = pnand %p1131_p6, %p1125_p3 }
   0xf   :  { %1135 = shalt.err (!%p1132_p7)
}
  0x10   :  { %s1185_s28 = smov 128   ;;  %s1186_s29 = smov 8  }
  0x11   :  { %37 = dma.hbm_to_vmem [thread:$0]  %s1299_s2, 8192, %s32_s19, [#allocation5], %s1185_s28, %s1185_s28, %s1186_s29  }
  0x12   :  { %s1187_s7 = smov [#allocation2]   ;;  %s1136_s11 = scalar_lea.hbm %s1298_s1, 1024 }
  0x13   :  { %s19_s8 = sshll.u32 %s1187_s7, 4  ;;  %p1137_p8 = scmp.ne.s32.totalorder %s1298_s1, %s1136_s11  ;;  %s20_s8 = int_to_ptr.vmem [resolvable:$true] %s19_s8 }
  0x14   :  { %p1140_p9 = scmp.lt.u32.totalorder %s1136_s11, %s1298_s1 }
  0x16   :  { %p1142_p10 = pnand %p1140_p9, %p1137_p8 }
  0x18   :  { %1145 = shalt.err (!%p1142_p10)
}
  0x19   :  { %s1146_s16 = scalar_lea.vmem %s20_s8, 1024  ;;  %p1151_p12 = scmp.lt.s32.totalorder %s20_s8, %s20_s8 }
  0x1a   :  { %p1147_p11 = scmp.ne.s32.totalorder %s20_s8, %s1146_s16  ;;  %p1152_p13 = scmp.lt.s32.totalorder %s1146_s16, %s1146_s16 }
  0x1c   :  { %p1153_p0 = por %p1152_p13, %p1151_p12 }
  0x1e   :  { %p1154_p1 = pnand %p1153_p0, %p1147_p11 }
  0x20   :  { %1157 = shalt.err (!%p1154_p1)
}
  0x21   :  { %s1188_s2 = smov 256   ;;  %s1189_s17 = smov 16  }
  0x22   :  { %25 = dma.hbm_to_vmem [thread:$0]  %s1298_s1, 1024, %s20_s8, [#allocation3], %s1188_s2, %s1188_s2, %s1189_s17  }
  0x23   :  { %s1190_s20 = smov [#allocation6]   ;;  %s1158_s24 = scalar_lea.hbm %s1300_s3, 4096 }
  0x24   :  { %s43_s21 = sshll.u32 %s1190_s20, 4  ;;  %p1159_p2 = scmp.ne.s32.totalorder %s1300_s3, %s1158_s24  ;;  %s44_s21 = int_to_ptr.vmem [resolvable:$true] %s43_s21 }
  0x25   :  { %p1162_p3 = scmp.lt.u32.totalorder %s1158_s24, %s1300_s3 }
  0x27   :  { %p1164_p4 = pnand %p1162_p3, %p1159_p2 }
  0x29   :  { %1167 = shalt.err (!%p1164_p4)
}
  0x2a   :  { %s1168_s6 = scalar_lea.vmem %s44_s21, 4096  ;;  %p1173_p6 = scmp.lt.s32.totalorder %s44_s21, %s44_s21 }
  0x2b   :  { %p1169_p5 = scmp.ne.s32.totalorder %s44_s21, %s1168_s6  ;;  %p1174_p7 = scmp.lt.s32.totalorder %s1168_s6, %s1168_s6 }
  0x2d   :  { %p1175_p8 = por %p1174_p7, %p1173_p6 }
  0x2f   :  { %p1176_p9 = pnand %p1175_p8, %p1169_p5 }
  0x31   :  { %1179 = shalt.err (!%p1176_p9)
}
  0x32   :  { %49 = dma.hbm_to_vmem [thread:$0]  %s1300_s3, 4096, %s44_s21, [#allocation5], %s1185_s28, %s1185_s28, %s1186_s29  }
  0x33   :  { %1180 = dma.done.wait [#allocation3], 1024  }
  0x34   :  { %1181 = vsyncadd [#allocation3], 4294966272 }
  0x35   :  { %1182 = dma.done.wait [#allocation5], 12288  }
  0x36   :  { %1183 = vsyncadd [#allocation5], 4294955008  ;;  %v1191_v0 = vmov 0   ;;  %v1000_v1 = vld [vmem:[#allocation2 + $0x4] ss:$16 sps:$4 sm:$0xff]   ;;  %vm137_vm0 = vcmask 261120  }
  0x37   :  { %173 = vmatprep.mubr.bf16.mxu0 %v1191_v0  ;;  %v1002_v2 = vld [vmem:[#allocation2] ss:$16 sps:$4 sm:$0xff]   ;;  %141 = vmatprep.subr.bf16.mxu0 %v1000_v1  ;;  %v1003_v3 = vld [vmem:[#allocation2 + $0x24] ss:$16 sps:$4 sm:$0xff]   ;;  %v1008_v6 = vld [vmem:[#allocation2 + $0xc] ss:$16 sps:$4 sm:$0xff]  }
  0x38   :  { %v1005_v4 = vld [vmem:[#allocation2 + $0x20] ss:$16 sps:$4 sm:$0xff]   ;;  %142 = vmatpush1.bf16.msra.mxu0 %v1002_v2  ;;  %v1006_v7 = vld [vmem:[#allocation2 + $0x8] ss:$16 sps:$4 sm:$0xff]   ;;  %v1012_v9 = vld [vmem:[#allocation4 + $0x4] ss:$8 sps:$4 sm:$0xff]  }
  0x39   :  { %v62_v5 = vld [vmem:[%s1297_s0] sm:$0xff]  ;;  %143 = vmatprep.subr.bf16.mxu0 %v1003_v3  ;;  %v1015_v11 = vld [vmem:[#allocation4 + $0x14] ss:$8 sps:$4 sm:$0xff]   ;;  %626 = vmatprep.subr.bf16.mxu1 %v1012_v9  ;;  %v1017_v13 = vld [vmem:[#allocation4 + $0x10] ss:$8 sps:$4 sm:$0xff]  }
  0x3a   :  { %v67_v8 = vpack.c.bf16 %v62_v5, %v62_v5  ;;  %v1014_v10 = vld [vmem:[#allocation4] ss:$8 sps:$4 sm:$0xff]   ;;  %v1011_v12 = vld [vmem:[#allocation2 + $0x2c] ss:$16 sps:$4 sm:$0xff]   ;;  %v1029_v21 = vld [vmem:[#allocation4 + $0x30] ss:$8 sps:$4 sm:$0xff]  }
  0x3b   :  { %627 = vmatpush1.bf16.msra.mxu1 %v1014_v10  ;;  %v1018_v14 = vld [vmem:[#allocation4 + $0x24] ss:$8 sps:$4 sm:$0xff]   ;;  %v1009_v15 = vld [vmem:[#allocation2 + $0x28] ss:$16 sps:$4 sm:$0xff]   ;;  %v1024_v18 = vld [vmem:[#allocation4 + $0x34] ss:$8 sps:$4 sm:$0xff]  }
  0x3c   :  { %144 = vmatpush1.bf16.msra.mxu0 %v1005_v4  ;;  %628 = vmatprep.subr.bf16.mxu1 %v1015_v11  ;;  %v1022_v16 = vld [vmem:[#allocation4 + $0x104] ss:$8 sps:$4 sm:$0xff]   ;;  %v1023_v17 = vld [vmem:[#allocation4 + $0x20] ss:$8 sps:$4 sm:$0xff]   ;;  %v1028_v20 = vld [vmem:[#allocation4 + $0x114] ss:$8 sps:$4 sm:$0xff]  }
  0x3d   :  { %182 = vmatprep.subr.bf16.mxu0 %v1008_v6  ;;  %v1020_v19 = vld [vmem:[#allocation4 + $0x100] ss:$8 sps:$4 sm:$0xff]   ;;  %v1030_v22 = vld [vmem:[#allocation4 + $0x44] ss:$8 sps:$4 sm:$0xff]   ;;  %v1026_v23 = vld [vmem:[#allocation4 + $0x110] ss:$8 sps:$4 sm:$0xff]  }
  0x3e   :  { %v1034_v24 = vld [vmem:[#allocation4 + $0x124] ss:$8 sps:$4 sm:$0xff]   ;;  %v1035_v25 = vld [vmem:[#allocation4 + $0x40] ss:$8 sps:$4 sm:$0xff]   ;;  %v1036_v26 = vld [vmem:[#allocation4 + $0x54] ss:$8 sps:$4 sm:$0xff]  }
  0x3f   :  { %854 = vmatmul.mubr.msk.bf16.vlgmr.msra.gmra.mrb[0].mxu0 %vm137_vm0, %v67_v8  ;;  %629 = vmatpush1.bf16.msra.mxu1 %v1017_v13  ;;  %v1032_v27 = vld [vmem:[#allocation4 + $0x120] ss:$8 sps:$4 sm:$0xff]   ;;  %v1040_v28 = vld [vmem:[#allocation4 + $0x134] ss:$8 sps:$4 sm:$0xff]   ;;  %v1041_v29 = vld [vmem:[#allocation4 + $0x50] ss:$8 sps:$4 sm:$0xff]  }
  0x40   :  { %183 = vmatpush1.bf16.msra.mxu0 %v1006_v7  ;;  %214 = vmatprep.mubr.bf16.mxu0 %v1191_v0  ;;  %v1042_v30 = vld [vmem:[#allocation4 + $0x64] ss:$8 sps:$4 sm:$0xff]   ;;  %v1038_v31 = vld [vmem:[#allocation4 + $0x130] ss:$8 sps:$4 sm:$0xff]   ;;  %v1047_v33 = vld [vmem:[#allocation4 + $0x60] ss:$8 sps:$4 sm:$0xff]  }
  0x41   :  { %184 = vmatprep.subr.bf16.mxu0 %v1011_v12  ;;  %630 = vmatprep.subr.bf16.mxu1 %v1018_v14  ;;  %v1046_v32 = vld [vmem:[#allocation4 + $0x144] ss:$8 sps:$4 sm:$0xff]   ;;  %v1048_v34 = vld [vmem:[#allocation4 + $0x74] ss:$8 sps:$4 sm:$0xff]   ;;  %v1044_v35 = vld [vmem:[#allocation4 + $0x140] ss:$8 sps:$4 sm:$0xff]   ;;  %v77_v14 = vlaneseq }
  0x42   :  { %v1052_v36 = vld [vmem:[#allocation4 + $0x154] ss:$8 sps:$4 sm:$0xff]   ;;  %v1053_v37 = vld [vmem:[#allocation4 + $0x70] ss:$8 sps:$4 sm:$0xff]   ;;  %v1054_v38 = vld [vmem:[#allocation4 + $0x84] ss:$8 sps:$4 sm:$0xff]  }
  0x43   :  { %631 = vmatpush1.bf16.msra.mxu1 %v1023_v17  ;;  %v1050_v39 = vld [vmem:[#allocation4 + $0x150] ss:$8 sps:$4 sm:$0xff]   ;;  %v1058_v40 = vld [vmem:[#allocation4 + $0x164] ss:$8 sps:$4 sm:$0xff]   ;;  %v1059_v41 = vld [vmem:[#allocation4 + $0x80] ss:$8 sps:$4 sm:$0xff]  }
  0x44   :  { %185 = vmatpush1.bf16.msra.mxu0 %v1009_v15  ;;  %632 = vmatprep.subr.bf16.mxu1 %v1024_v18  ;;  %v1060_v42 = vld [vmem:[#allocation4 + $0x94] ss:$8 sps:$4 sm:$0xff]   ;;  %v1056_v43 = vld [vmem:[#allocation4 + $0x160] ss:$8 sps:$4 sm:$0xff]   ;;  %v1065_v45 = vld [vmem:[#allocation4 + $0x90] ss:$8 sps:$4 sm:$0xff]  }
  0x45   :  { %667 = vmatprep.subr.bf16.mxu0 %v1022_v16  ;;  %v1064_v44 = vld [vmem:[#allocation4 + $0x174] ss:$8 sps:$4 sm:$0xff]   ;;  %v1066_v46 = vld [vmem:[#allocation4 + $0xa4] ss:$8 sps:$4 sm:$0xff]   ;;  %v1062_v47 = vld [vmem:[#allocation4 + $0x170] ss:$8 sps:$4 sm:$0xff]  }
  0x46   :  { %v1070_v48 = vld [vmem:[#allocation4 + $0x184] ss:$8 sps:$4 sm:$0xff]   ;;  %v1071_v49 = vld [vmem:[#allocation4 + $0xa0] ss:$8 sps:$4 sm:$0xff]   ;;  %v1072_v50 = vld [vmem:[#allocation4 + $0xb4] ss:$8 sps:$4 sm:$0xff]  }
  0x47   :  { %855 = vmatmul.mubr.msk.bf16.vlgmr.msra.gmra.mrb[4].mxu0 %vm137_vm0, %v67_v8  ;;  %633 = vmatpush1.bf16.msra.mxu1 %v1029_v21  ;;  %v1068_v51 = vld [vmem:[#allocation4 + $0x180] ss:$8 sps:$4 sm:$0xff]   ;;  %v1076_v52 = vld [vmem:[#allocation4 + $0x194] ss:$8 sps:$4 sm:$0xff]   ;;  %v1077_v53 = vld [vmem:[#allocation4 + $0xb0] ss:$8 sps:$4 sm:$0xff]  }
  0x48   :  { %668 = vmatpush1.bf16.msra.mxu0 %v1020_v19  ;;  %634 = vmatprep.subr.bf16.mxu1 %v1030_v22  ;;  %v1078_v54 = vld [vmem:[#allocation4 + $0xc4] ss:$8 sps:$4 sm:$0xff]   ;;  %v1074_v55 = vld [vmem:[#allocation4 + $0x190] ss:$8 sps:$4 sm:$0xff]   ;;  %v1083_v57 = vld [vmem:[#allocation4 + $0xc0] ss:$8 sps:$4 sm:$0xff]  }
  0x49   :  { %669 = vmatprep.subr.bf16.mxu0 %v1028_v20  ;;  %v1082_v56 = vld [vmem:[#allocation4 + $0x1a4] ss:$8 sps:$4 sm:$0xff]   ;;  %v1084_v58 = vld [vmem:[#allocation4 + $0xd4] ss:$8 sps:$4 sm:$0xff]   ;;  %v1080_v59 = vld [vmem:[#allocation4 + $0x1a0] ss:$8 sps:$4 sm:$0xff]  }
  0x4a   :  { %v1088_v60 = vld [vmem:[#allocation4 + $0x1b4] ss:$8 sps:$4 sm:$0xff]   ;;  %v1089_v61 = vld [vmem:[#allocation4 + $0xd0] ss:$8 sps:$4 sm:$0xff]   ;;  %v1090_v63 = vld [vmem:[#allocation4 + $0xe4] ss:$8 sps:$4 sm:$0xff]  }
  0x4b   :  { %635 = vmatpush1.bf16.msra.mxu1 %v1035_v25  ;;  %v1086_v62 = vld [vmem:[#allocation4 + $0x1b0] ss:$8 sps:$4 sm:$0xff]   ;;  %v1094_v0 = vld [vmem:[#allocation4 + $0x1c4] ss:$8 sps:$4 sm:$0xff]   ;;  %v1092_v1 = vld [vmem:[#allocation4 + $0x1c0] ss:$8 sps:$4 sm:$0xff]  }
  0x4c   :  { %670 = vmatpush1.bf16.msra.mxu0 %v1026_v23  ;;  %636 = vmatprep.subr.bf16.mxu1 %v1036_v26  ;;  %v1095_v2 = vld [vmem:[#allocation4 + $0xe0] ss:$8 sps:$4 sm:$0xff]   ;;  %v1096_v3 = vld [vmem:[#allocation4 + $0xf4] ss:$8 sps:$4 sm:$0xff]   ;;  %v1098_v5 = vld [vmem:[#allocation4 + $0x1d0] ss:$8 sps:$4 sm:$0xff]  }
  0x4d   :  { %671 = vmatprep.subr.bf16.mxu0 %v1034_v24  ;;  %v1100_v4 = vld [vmem:[#allocation4 + $0x1d4] ss:$8 sps:$4 sm:$0xff]   ;;  %v1101_v6 = vld [vmem:[#allocation4 + $0xf0] ss:$8 sps:$4 sm:$0xff]   ;;  %v1104_v7 = vld [vmem:[#allocation4 + $0x1e4] ss:$8 sps:$4 sm:$0xff]  }
  0x4e   :  { %v1102_v8 = vld [vmem:[#allocation4 + $0x1e0] ss:$8 sps:$4 sm:$0xff]   ;;  %v1107_v9 = vld [vmem:[#allocation4 + $0x1f4] ss:$8 sps:$4 sm:$0xff]   ;;  %v1105_v10 = vld [vmem:[#allocation4 + $0x1f0] ss:$8 sps:$4 sm:$0xff]  }
  0x4f   :  { %637 = vmatpush1.bf16.msra.mxu1 %v1041_v29  ;;  %v726_v11 = vld [vmem:[#allocation6 + $0x80] sm:$0xff]  ;;  %v727_v12 = vld [vmem:[#allocation6 + $0x88] sm:$0xff]  ;;  %v1270_v15 = vshrl.u32 %v77_v14, 7 }
  0x50   :  { %672 = vmatpush1.bf16.msra.mxu0 %v1032_v27  ;;  %638 = vmatprep.subr.bf16.mxu1 %v1042_v30  ;;  %v956_v13 = vpack.c.bf16 %v727_v12, %v726_v11  ;;  %v63_v17 = vld [vmem:[%s1301_s4] ss:$4 sm:$0xf]  ;;  %v720_v11 = vld [vmem:[#allocation6 + $0x50] sm:$0xff]  ;;  %v721_v12 = vld [vmem:[#allocation6 + $0x58] sm:$0xff] }
  0x51   :  { %673 = vmatprep.subr.bf16.mxu0 %v1040_v28  ;;  %v79_v16 = vsub.s32 0, %v1270_v15  ;;  %v83_v18 = vsub.s32 1, %v1270_v15  ;;  %v87_v24 = vsub.s32 2, %v1270_v15  ;;  %v91_v27 = vsub.s32 3, %v1270_v15  ;;  %v710_v30 = vld [vmem:[#allocation6] sm:$0xff] }
  0x53   :  { %639 = vmatpush1.bf16.msra.mxu1 %v1047_v33  ;;  %v80_v19 = vrot.slane %v63_v17, %v79_v16  ;;  %v84_v20 = vrot.slane %v63_v17, %v83_v18  ;;  %v728_v33 = vld [vmem:[#allocation6 + $0x90] sm:$0xff] }
  0x54   :  { %674 = vmatpush1.bf16.msra.mxu0 %v1038_v31  ;;  %640 = vmatprep.subr.bf16.mxu1 %v1048_v34  ;;  %v711_v31 = vld [vmem:[#allocation6 + $0x8] sm:$0xff]  ;;  %v729_v34 = vld [vmem:[#allocation6 + $0x98] sm:$0xff] }
  0x55   :  { %675 = vmatprep.subr.bf16.mxu0 %v1046_v32 }
  0x57   :  { %641 = vmatpush1.bf16.msra.mxu1 %v1053_v37  ;;  %v92_v37 = vrot.slane %v63_v17, %v91_v27  ;;  %v724_v27 = vld [vmem:[#allocation6 + $0x70] sm:$0xff] }
  0x58   :  { %676 = vmatpush1.bf16.msra.mxu0 %v1044_v35  ;;  %642 = vmatprep.subr.bf16.mxu1 %v1054_v38  ;;  %v88_v35 = vrot.slane %v63_v17, %v87_v24  ;;  %v958_v38 = vpack.c.bf16 %v711_v31, %v710_v30  ;;  %v738_v17 = vld [vmem:[#allocation6 + $0xe0] sm:$0xff]  ;;  %v740_v24 = vld [vmem:[#allocation6 + $0xf0] sm:$0xff] }
  0x59   :  { %677 = vmatprep.subr.bf16.mxu0 %v1052_v36  ;;  %v845_v30 = vld [vmem:[%s1301_s4 + $0x1] ss:$4 sm:$0x3] }
  0x5b   :  { %643 = vmatpush1.bf16.msra.mxu1 %v1059_v41  ;;  %v712_v41 = vld [vmem:[#allocation6 + $0x10] sm:$0xff] }
  0x5c   :  { %678 = vmatpush1.bf16.msra.mxu0 %v1050_v39  ;;  %644 = vmatprep.subr.bf16.mxu1 %v1060_v42  ;;  %v713_v42 = vld [vmem:[#allocation6 + $0x18] sm:$0xff] }
  0x5d   :  { %679 = vmatprep.subr.bf16.mxu0 %v1058_v40  ;;  %v960_v40 = vpack.c.bf16 %v729_v34, %v728_v33  ;;  %v299_v34 = vrot.slane %v845_v30, %v79_v16  ;;  %v920_v16 = vld [vmem:[%s1301_s4 + $0x2] ss:$0 sm:$0xff] }
  0x5f   :  { %645 = vmatpush1.bf16.msra.mxu1 %v1065_v45  ;;  %v731_v45 = vld [vmem:[#allocation6 + $0xa8] sm:$0xff] }
  0x60   :  { %680 = vmatpush1.bf16.msra.mxu0 %v1056_v43  ;;  %646 = vmatprep.subr.bf16.mxu1 %v1066_v46 }
  0x61   :  { %681 = vmatprep.subr.bf16.mxu0 %v1064_v44  ;;  %v730_v44 = vld [vmem:[#allocation6 + $0xa0] sm:$0xff] }
  0x63   :  { %647 = vmatpush1.bf16.msra.mxu1 %v1071_v49 }
  0x64   :  { %682 = vmatpush1.bf16.msra.mxu0 %v1062_v47  ;;  %648 = vmatprep.subr.bf16.mxu1 %v1072_v50  ;;  %v962_v50 = vpack.c.bf16 %v713_v42, %v712_v41 }
  0x65   :  { %683 = vmatprep.subr.bf16.mxu0 %v1070_v48 }
  0x67   :  { %649 = vmatpush1.bf16.msra.mxu1 %v1077_v53  ;;  %v964_v53 = vpack.c.bf16 %v731_v45, %v730_v44 }
  0x68   :  { %684 = vmatpush1.bf16.msra.mxu0 %v1068_v51  ;;  %650 = vmatprep.subr.bf16.mxu1 %v1078_v54  ;;  %v714_v54 = vld [vmem:[#allocation6 + $0x20] sm:$0xff] }
  0x69   :  { %685 = vmatprep.subr.bf16.mxu0 %v1076_v52 }
  0x6b   :  { %651 = vmatpush1.bf16.msra.mxu1 %v1083_v57  ;;  %v732_v57 = vld [vmem:[#allocation6 + $0xb0] sm:$0xff] }
  0x6c   :  { %686 = vmatpush1.bf16.msra.mxu0 %v1074_v55  ;;  %652 = vmatprep.subr.bf16.mxu1 %v1084_v58  ;;  %v715_v55 = vld [vmem:[#allocation6 + $0x28] sm:$0xff]  ;;  %v733_v58 = vld [vmem:[#allocation6 + $0xb8] sm:$0xff] }
  0x6d   :  { %687 = vmatprep.subr.bf16.mxu0 %v1082_v56 }
  0x6f   :  { %653 = vmatpush1.bf16.msra.mxu1 %v1089_v61 }
  0x70   :  { %688 = vmatpush1.bf16.msra.mxu0 %v1080_v59  ;;  %654 = vmatprep.subr.bf16.mxu1 %v1090_v63  ;;  %v716_v63 = vld [vmem:[#allocation6 + $0x30] sm:$0xff] }
  0x71   :  { %689 = vmatprep.subr.bf16.mxu0 %v1088_v60  ;;  %v966_v60 = vpack.c.bf16 %v715_v55, %v714_v54 }
  0x73   :  { %655 = vmatpush1.bf16.msra.mxu1 %v1095_v2  ;;  %v735_v2 = vld [vmem:[#allocation6 + $0xc8] sm:$0xff] }
  0x74   :  { %690 = vmatpush1.bf16.msra.mxu0 %v1086_v62  ;;  %656 = vmatprep.subr.bf16.mxu1 %v1096_v3  ;;  %v968_v62 = vpack.c.bf16 %v733_v58, %v732_v57  ;;  %v833_v57 = vand.u32 127, %v77_v14 }
  0x75   :  { %691 = vmatprep.subr.bf16.mxu0 %v1094_v0  ;;  %v717_v0 = vld [vmem:[#allocation6 + $0x38] sm:$0xff] }
  0x76   :  { %v970_v3 = vpack.c.bf16 %v717_v0, %v716_v63  ;;  %vm835_vm2 = vcmp.lt.s32.totalorder %v833_v57, 8  ;;  %vm834_vm3 = vcmp.lt.s32.totalorder %v833_v57, 4 }
  0x77   :  { %657 = vmatpush1.bf16.msra.mxu1 %v1101_v6  ;;  %v719_v6 = vld [vmem:[#allocation6 + $0x48] sm:$0xff] }
  0x78   :  { %692 = vmatpush1.bf16.msra.mxu0 %v1092_v1  ;;  %957 = vmatprep.subr.bf16.mxu1 %v956_v13  ;;  %v734_v1 = vld [vmem:[#allocation6 + $0xc0] sm:$0xff]  ;;  %v978_v13 = vpack.c.bf16 %v721_v12, %v720_v11 }
  0x79   :  { %693 = vmatprep.subr.bf16.mxu0 %v1100_v4  ;;  %v972_v4 = vpack.c.bf16 %v735_v2, %v734_v1 }
  0x7c   :  { %694 = vmatpush1.bf16.msra.mxu0 %v1098_v5  ;;  %v718_v5 = vld [vmem:[#allocation6 + $0x40] sm:$0xff] }
  0x7d   :  { %695 = vmatprep.subr.bf16.mxu0 %v1104_v7  ;;  %v974_v7 = vpack.c.bf16 %v719_v6, %v718_v5 }
  0x80   :  { %696 = vmatpush1.bf16.msra.mxu0 %v1102_v8  ;;  %v736_v8 = vld [vmem:[#allocation6 + $0xd0] sm:$0xff] }
  0x81   :  { %697 = vmatprep.subr.bf16.mxu0 %v1107_v9  ;;  %v737_v9 = vld [vmem:[#allocation6 + $0xd8] sm:$0xff] }
  0x84   :  { %698 = vmatpush1.bf16.msra.mxu0 %v1105_v10  ;;  %v976_v10 = vpack.c.bf16 %v737_v9, %v736_v8 }
 0x112   :  { %v175_v21 = vpop.f32.mrb[0].mxu0 }
 0x113   :  { %v176_v22 = vadd.f32 %v175_v21, %v80_v19  ;;  %v177_v23 = vpop.f32.mrb[1].mxu0  ;;  %v739_v19 = vld [vmem:[#allocation6 + $0xe8] sm:$0xff]  ;;  %v722_v21 = vld [vmem:[#allocation6 + $0x60] sm:$0xff] }
 0x114   :  { %v178_v25 = vadd.f32 %v177_v23, %v84_v20  ;;  %v179_v26 = vpop.f32.mrb[2].mxu0  ;;  %v980_v20 = vpack.c.bf16 %v739_v19, %v738_v17 }
 0x115   :  { %v223_v28 = vmax.f32 %v176_v22, 0.0  ;;  %v180_v29 = vpop.f32.mrb[3].mxu0  ;;  %v723_v22 = vld [vmem:[#allocation6 + $0x68] sm:$0xff] }
 0x116   :  { %v224_v32 = vmax.f32 %v178_v25, 0.0  ;;  %v982_v23 = vpack.c.bf16 %v723_v22, %v722_v21  ;;  %v741_v25 = vld [vmem:[#allocation6 + $0xf8] sm:$0xff] }
 0x117   :  { %v227_v39 = vpack.c.bf16 %v223_v28, %v223_v28  ;;  %v984_v26 = vpack.c.bf16 %v741_v25, %v740_v24  ;;  %v725_v28 = vld [vmem:[#allocation6 + $0x78] sm:$0xff] }
 0x118   :  { %v228_v36 = vpack.c.bf16 %v224_v32, %v224_v32  ;;  %v986_v29 = vpack.c.bf16 %v725_v28, %v724_v27 }
 0x11a   :  { %v216_v43 = vpop.f32.mrb[4].mxu0  ;;  %658 = vmatprep.mubr.bf16.mxu1 %v228_v36  ;;  %v303_v36 = vrot.slane %v845_v30, %v83_v18 }
 0x11b   :  { %v217_v46 = vadd.f32 %v216_v43, %v88_v35  ;;  %v218_v47 = vpop.f32.mrb[5].mxu0  ;;  %659 = vmatmul.mubr.bf16.vlgmr.msra.gmra.mrb[0].mxu1 %v227_v39 }
 0x11c   :  { %v219_v48 = vadd.f32 %v218_v47, %v92_v37  ;;  %v220_v49 = vpop.f32.mrb[6].mxu0  ;;  %959 = vmatpush3.bf16.msra.mxu1 %v958_v38 }
 0x11d   :  { %v225_v51 = vmax.f32 %v217_v46, 0.0  ;;  %v221_v52 = vpop.f32.mrb[7].mxu0  ;;  %961 = vmatprep.subr.bf16.mxu1 %v960_v40 }
 0x11e   :  { %v226_v56 = vmax.f32 %v219_v48, 0.0 }
 0x11f   :  { %v229_v61 = vpack.c.bf16 %v225_v51, %v225_v51 }
 0x120   :  { %v230_v59 = vpack.c.bf16 %v226_v56, %v226_v56  ;;  %963 = vmatpush3.bf16.msra.mxu1 %v962_v50 }
 0x121   :  { %965 = vmatprep.subr.bf16.mxu1 %v964_v53 }
 0x122   :  { %699 = vmatprep.mubr.bf16.mxu0 %v230_v59 }
 0x123   :  { %700 = vmatmul.mubr.bf16.vlgmr.msra.gmra.mrb[8].mxu0 %v229_v61 }
 0x124   :  { %967 = vmatpush3.bf16.msra.mxu1 %v966_v60 }
 0x125   :  { %969 = vmatprep.subr.bf16.mxu1 %v968_v62 }
 0x128   :  { %971 = vmatpush3.bf16.msra.mxu1 %v970_v3 }
 0x129   :  { %973 = vmatprep.subr.bf16.mxu1 %v972_v4 }
 0x12c   :  { %975 = vmatpush3.bf16.msra.mxu1 %v974_v7 }
 0x12d   :  { %977 = vmatprep.subr.bf16.mxu1 %v976_v10 }
 0x130   :  { %979 = vmatpush3.bf16.msra.mxu1 %v978_v13 }
 0x131   :  { %981 = vmatprep.subr.bf16.mxu1 %v980_v20 }
 0x134   :  { %983 = vmatpush3.bf16.msra.mxu1 %v982_v23 }
 0x135   :  { %985 = vmatprep.subr.bf16.mxu1 %v984_v26 }
 0x138   :  { %987 = vmatpush3.bf16.msra.mxu1 %v986_v29 }
 0x1ee   :  { %v660_v31 = vpop.f32.mrb[0].mxu1 }
 0x1ef   :  { %v662_v32 = vpop.f32.mrb[1].mxu1  ;;  %v661_v37 = vadd.f32 %v660_v31, %v299_v34 }
 0x1f0   :  { %v664_v33 = vpop.f32.mrb[2].mxu1  ;;  %v663_v38 = vadd.f32 %v662_v32, %v303_v36 }
 0x1f1   :  { %v665_v35 = vpop.f32.mrb[3].mxu1 }
 0x1f6   :  { %v701_v39 = vpop.f32.mrb[8].mxu0 }
 0x1f7   :  { %v702_v40 = vadd.f32 %v701_v39, %v661_v37  ;;  %v703_v41 = vpop.f32.mrb[9].mxu0 }
 0x1f8   :  { %v704_v42 = vadd.f32 %v703_v41, %v663_v38  ;;  %v705_v43 = vpop.f32.mrb[10].mxu0 }
 0x1f9   :  { %v706_v44 = vpop.f32.mrb[11].mxu0  ;;  %v708_v46 = vmax.f32 %v702_v40, 0.0 }
 0x1fa   :  { %v709_v45 = vmax.f32 %v704_v42, 0.0 }
 0x1fc   :  { %810 = vmatprep.mubr.f32.mxu1 %v709_v45 }
 0x1fd   :  { %811 = vmatmul.mubr.f32.vlgmr.msra.gmra.mrb[4].mxu1 %v708_v46 }
 0x2d0   :  { %v953_v47 = vpop.f32.mrb[4].mxu1 }
 0x2d1   :  { %v954_v48 = vpop.f32.mrb[5].mxu1 }
 0x2d2   :  { %v955_v15 = vadd.f32 %v954_v48, %v953_v47 }
 0x2d4   :  { %v813_v18 = vadd.f32 %v955_v15, %v920_v16 }
 0x2d6   :  { %v818_v49 = vand.u32 2147483647, %v813_v18  ;;  %v817_v61 = vmax.f32 %v813_v18, 0.0 }
 0x2d8   :  { %v819_v50 = vsub.f32 0.0, %v818_v49 }
 0x2da   :  { %v820_v51 = vmul.f32 1.442695, %v819_v50 }
 0x2dc   :  { %1108 = vpow2.f32 %v820_v51 }
 0x2e6   :  { %v1109_v52 = vpop.eup %1108 }
 0x2e7   :  { %v822_v53 = vadd.f32 1.0, %v1109_v52  ;;  %v825_v54 = vmul.f32 -0.5, %v1109_v52  ;;  %v828_v56 = vand.u32 2147483647, %v1109_v52 }
 0x2e9   :  { %1110 = vlog2.f32 %v822_v53  ;;  %v826_v55 = vadd.f32 1.0, %v825_v54  ;;  %vm829_vm1 = vcmp.lt.f32.partialorder %v828_v56, 0.0004427343 }
 0x2ea   :  { %1112 = vtanh.f32 %v813_v18 }
 0x2eb   :  { %v827_v60 = vmul.f32 %v1109_v52, %v826_v55 }
 0x2f3   :  { %v1111_v58 = vpop.eup %1110 }
 0x2f4   :  { %v824_v59 = vmul.f32 0.6931472, %v1111_v58  ;;  %v1113_v0 = vpop.eup %1112 }
 0x2f6   :  { %v830_v62 = vsel %vm829_vm1, %v827_v60, %v824_v59 }
 0x2f7   :  { %v831_v63 = vadd.f32 %v830_v62, %v817_v61 }
 0x2f9   :  { %v836_v1 = vsel %vm835_vm2, %v831_v63, %v813_v18 }
 0x2fa   :  { %v837_v2 = vsel %vm834_vm3, %v1113_v0, %v836_v1 }
 0x2fb   :  { %838 = vst [vmem:[%s1302_s5] sm:$0xff] %v837_v2 }
 0x2fc   :  { %843 = vsyncpa [#allocation3], 1 }
 0x2fd   :  { %844 = vsyncpa [#allocation5], 1 }

</bundles_post_ra>
